<compile_context>
chip_gen: v5e
topology: v5e:2x2
jax: 0.10.0
libtpu: 0.0.40
codegen_flags: <defaults>
</compile_context>

<pallas_src>
import jax
import jax.numpy as jnp
from jax.experimental import pallas as pl
from jax.experimental.pallas import tpu as pltpu


def _attention_kernel(static_ref, dld_ref, dd_ref, dec_ref, e_ref, p_ref, out_ref):
    # static_ref / dld_ref / dd_ref : (Bt, H*S)  lane-dense flat hidden streams
    # dec_ref                       : (Bt, H)    decoder state (H on lanes)
    # e_ref                         : (H, H*S)   0/1 expansion: E[h, h*S+s] = 1
    # p_ref                         : (H*S, S)   weighted selection: P[h*S+s, s'] = W[h]*(s==s')
    # out_ref                       : (Bt, S)
    f32 = jnp.float32
    # VPU: sum the three pre-computed hidden streams (accumulate in f32).
    flat = (static_ref[...].astype(f32) + dld_ref[...].astype(f32)
            + dd_ref[...].astype(f32))
    # MXU: expand the decoder state to the flat layout (avoids a lanes->sublanes
    # relayout that a [:, :, None] broadcast would require).
    dec_flat = jnp.dot(dec_ref[...].astype(f32), e_ref[...],
                       precision=jax.lax.Precision.HIGHEST,
                       preferred_element_type=f32)
    # EUP: tanh on the lane-dense tile.
    t = jnp.tanh(flat + dec_flat)
    # MXU: weighted reduction over H folded with the seq selection (K = H*S).
    out_ref[...] = jnp.dot(t, p_ref[...],
                           precision=jax.lax.Precision.HIGHEST,
                           preferred_element_type=f32).astype(out_ref.dtype)


def _pick_batch_tile(B, HS, itemsize, per_stream_block_budget=2 * 1024 * 1024):
    """Pick the per-grid-step batch tile Bt for the flat (B, H*S) layout.

    Real VMEM footprint per step ~= 2 (double buffering) x 3 streams x block
    plus a few elementwise / matmul temporaries of the same size (~9-10x one
    block).  A 2 MiB per-stream block keeps the whole working set under
    ~20 MiB -- safe under the 32 MiB vmem limit on every generation (v7x has
    only 64 MiB physical VMEM; v5e/v6e have 128 MiB and could use a larger
    budget for huge production batches).
    No forced multi-step split: v5e/v6e are single-TC (extra steps are pure
    ~0.35 us overhead) and at small sizes a v7x 2-core split is also a loss.
    """
    hs_pad = ((HS + 127) // 128) * 128
    per_b = hs_pad * itemsize                      # one stream, one batch element
    bt = max(1, min(B, per_stream_block_budget // per_b))
    if bt < B:
        bt = max(8, (bt // 8) * 8)                 # sublane-aligned partial blocks
    return bt


def attention_forward(mark, static_hidden, dynamic_hidden_ld, dynamic_hidden_d,
                      decoder_hidden, W, *, per_stream_block_budget=2 * 1024 * 1024):
    """JAX wrapper matching Attention.forward. Returns (attns, mark)."""
    B, H, S = static_hidden.shape
    HS = H * S
    dtype = static_hidden.dtype

    # Flatten to lane-dense (B, H*S); contiguous row-major reshape (no copy).
    static_flat = static_hidden.reshape(B, HS)
    dld_flat = dynamic_hidden_ld.reshape(B, HS)
    dd_flat = dynamic_hidden_d.reshape(B, HS)

    # Constant matrices (f32, shared across all grid steps):
    #   E[h, h'*S + s] = (h == h')         -- decoder expansion to flat layout
    #   P[h*S + s, s'] = W[h] * (s == s')  -- weighted H-reduction + seq selection
    e_mat = jnp.repeat(jnp.eye(H, dtype=jnp.float32), S, axis=1)            # (H, H*S)
    p_mat = (W.reshape(H, 1, 1).astype(jnp.float32)
             * jnp.eye(S, dtype=jnp.float32)[None, :, :]).reshape(HS, S)    # (H*S, S)

    bt = _pick_batch_tile(B, HS, jnp.dtype(dtype).itemsize, per_stream_block_budget)
    grid = (pl.cdiv(B, bt),)

    # TODO(synk): if the producer can pre-sum static_hidden + dynamic_hidden_d +
    # dynamic_hidden_ld (decode-step-invariant terms), the kernel would stream 2
    # instead of 3 (B, H*S) arrays (~33% less HBM traffic).
    # TODO(synk): emitting the three streams in bfloat16 (kernel already upcasts
    # to f32 internally) would halve the streamed HBM bytes on every generation.

    attns = pl.pallas_call(
        _attention_kernel,
        out_shape=jax.ShapeDtypeStruct((B, S), dtype),
        grid_spec=pltpu.PrefetchScalarGridSpec(
            num_scalar_prefetch=0,
            grid=grid,
            in_specs=[
                pl.BlockSpec((bt, HS), lambda b: (b, 0)),   # static_hidden (flat)
                pl.BlockSpec((bt, HS), lambda b: (b, 0)),   # dynamic_hidden_ld (flat)
                pl.BlockSpec((bt, HS), lambda b: (b, 0)),   # dynamic_hidden_d (flat)
                pl.BlockSpec((bt, H),  lambda b: (b, 0)),   # decoder_hidden
                pl.BlockSpec((H, HS),  lambda b: (0, 0)),   # E (shared)
                pl.BlockSpec((HS, S),  lambda b: (0, 0)),   # P (shared)
            ],
            # Output is tiny (~1% of input traffic); a (bt, S) block is accepted
            # even though S=8 lanes means masked stores.
            out_specs=pl.BlockSpec((bt, S), lambda b: (b, 0)),
        ),
        compiler_params=pltpu.CompilerParams(
            dimension_semantics=("parallel",),
            vmem_limit_bytes=32 * 1024 * 1024,
        ),
    )(static_flat, dld_flat, dd_flat, decoder_hidden, e_mat, p_mat)

    return attns, mark


def attention_reference(mark, static_hidden, dynamic_hidden_ld, dynamic_hidden_d,
                        decoder_hidden, W):
    hidden = (decoder_hidden[:, :, None] + static_hidden
              + dynamic_hidden_d + dynamic_hidden_ld)
    attns = jnp.einsum("h,bhs->bs", W[0], jnp.tanh(hidden))
    return attns, mark


def _run_case(key, B, H, S, **fw_kwargs):
    k_w, k_s, k_ld, k_d, k_dec = jax.random.split(key, 5)

    # PyTorch init is zeros; use deterministic random values so the output is
    # non-trivial.  (The V parameter is unused in forward, as in PyTorch.)
    W = jax.random.normal(k_w, (1, H), dtype=jnp.float32) * 0.1
    static_hidden     = jax.random.normal(k_s,   (B, H, S), dtype=jnp.float32)
    dynamic_hidden_ld = jax.random.normal(k_ld,  (B, H, S), dtype=jnp.float32)
    dynamic_hidden_d  = jax.random.normal(k_d,   (B, H, S), dtype=jnp.float32)
    decoder_hidden    = jax.random.normal(k_dec, (B, H),    dtype=jnp.float32)
    mark = jnp.arange(B * S, dtype=jnp.float32).reshape(B, S)

    attns, mark_out = attention_forward(
        mark, static_hidden, dynamic_hidden_ld, dynamic_hidden_d, decoder_hidden, W,
        **fw_kwargs)
    attns = jax.block_until_ready(attns)

    ref_attns, _ = attention_reference(
        mark, static_hidden, dynamic_hidden_ld, dynamic_hidden_d, decoder_hidden, W)

    assert attns.shape == (B, S)
    assert jnp.allclose(attns, ref_attns, atol=1e-4, rtol=1e-4), "mismatch vs reference"
    assert jnp.array_equal(mark_out, mark)


if __name__ == "__main__":
    key = jax.random.PRNGKey(0)
    k0, k1 = jax.random.split(key)

    # Small shapes implied by the module: batch=2, hidden_size=32, num_nodes(seq)=8.
    # Whole batch fits in one lane-dense block -> grid=(1,), no per-step overhead.
    _run_case(k0, B=2, H=32, S=8)

    # Multi-step path: an artificially tiny per-stream budget forces bt=8, a
    # 4-step grid, and a partial trailing batch block (B=30 -> last block 6 rows).
    _run_case(k1, B=30, H=32, S=8, per_stream_block_budget=8 * 1024)

    print("KERNEL_OK")
</pallas_src>

<mosaic_0001>
module attributes {stable_mosaic.version = 11 : i64} {
  func.func @_attention_kernel(%arg0: i32, %arg1: memref<2x256xf32, #tpu.memory_space<vmem>>, %arg2: memref<2x256xf32, #tpu.memory_space<vmem>>, %arg3: memref<2x256xf32, #tpu.memory_space<vmem>>, %arg4: memref<2x32xf32, #tpu.memory_space<vmem>>, %arg5: memref<32x256xf32, #tpu.memory_space<vmem>>, %arg6: memref<256x8xf32, #tpu.memory_space<vmem>>, %arg7: memref<2x8xf32, #tpu.memory_space<vmem>>) attributes {dimension_semantics = [#tpu.dimension_semantics<parallel>], iteration_bounds = array<i64: 1>, scalar_prefetch = 0 : i64, scratch_operands = 0 : i64, tpu.core_type = #tpu.core_type<tc>, window_params = [{transform_indices = @transform_0, window_bounds = array<i64: 2, 256>}, {transform_indices = @transform_1, window_bounds = array<i64: 2, 256>}, {transform_indices = @transform_2, window_bounds = array<i64: 2, 256>}, {transform_indices = @transform_3, window_bounds = array<i64: 2, 32>}, {pipeline_mode = #tpu.pipeline_mode<synchronous>, transform_indices = @transform_4, window_bounds = array<i64: 32, 256>}, {pipeline_mode = #tpu.pipeline_mode<synchronous>, transform_indices = @transform_5, window_bounds = array<i64: 256, 8>}, {transform_indices = @transform_6, window_bounds = array<i64: 2, 8>}]} {
    %c0 = arith.constant 0 : index
    %c0_0 = arith.constant 0 : index
    %0 = vector.load %arg1[%c0, %c0_0] : memref<2x256xf32, #tpu.memory_space<vmem>>, vector<2x256xf32>
    %c0_1 = arith.constant 0 : index
    %c0_2 = arith.constant 0 : index
    %1 = vector.load %arg2[%c0_1, %c0_2] : memref<2x256xf32, #tpu.memory_space<vmem>>, vector<2x256xf32>
    %2 = arith.addf %0, %1 : vector<2x256xf32>
    %c0_3 = arith.constant 0 : index
    %c0_4 = arith.constant 0 : index
    %3 = vector.load %arg3[%c0_3, %c0_4] : memref<2x256xf32, #tpu.memory_space<vmem>>, vector<2x256xf32>
    %4 = arith.addf %2, %3 : vector<2x256xf32>
    %c0_5 = arith.constant 0 : index
    %c0_6 = arith.constant 0 : index
    %5 = vector.load %arg4[%c0_5, %c0_6] : memref<2x32xf32, #tpu.memory_space<vmem>>, vector<2x32xf32>
    %c0_7 = arith.constant 0 : index
    %c0_8 = arith.constant 0 : index
    %6 = vector.load %arg5[%c0_7, %c0_8] : memref<32x256xf32, #tpu.memory_space<vmem>>, vector<32x256xf32>
    %cst = arith.constant dense<0.000000e+00> : vector<2x256xf32>
    %7 = tpu.matmul %5, %6, %cst {dimension_numbers = #tpu.dot_dimension_numbers<[1], [0], [0], [1], [0, 0, 1, 1], [], []>, precision = #tpu.contract_precision<fp32>} : vector<2x32xf32>, vector<32x256xf32>, vector<2x256xf32> -> vector<2x256xf32>
    %8 = arith.addf %4, %7 : vector<2x256xf32>
    %9 = math.tanh %8 : vector<2x256xf32>
    %c0_9 = arith.constant 0 : index
    %c0_10 = arith.constant 0 : index
    %10 = vector.load %arg6[%c0_9, %c0_10] : memref<256x8xf32, #tpu.memory_space<vmem>>, vector<256x8xf32>
    %cst_11 = arith.constant dense<0.000000e+00> : vector<2x8xf32>
    %11 = tpu.matmul %9, %10, %cst_11 {dimension_numbers = #tpu.dot_dimension_numbers<[1], [0], [0], [1], [0, 0, 1, 1], [], []>, precision = #tpu.contract_precision<fp32>} : vector<2x256xf32>, vector<256x8xf32>, vector<2x8xf32> -> vector<2x8xf32>
    %c0_12 = arith.constant 0 : index
    %c0_13 = arith.constant 0 : index
    %12 = vector.load %arg7[%c0_12, %c0_13] : memref<2x8xf32, #tpu.memory_space<vmem>>, vector<2x8xf32>
    tpu.vector_store %arg7[%c0_12, %c0_13], %11 {strides = array<i32>} : memref<2x8xf32, #tpu.memory_space<vmem>>, vector<2x8xf32>,
    return
  }
  func.func @transform_0(%arg0: i32) -> (i32, i32) {
    %c0_i32 = arith.constant 0 : i32
    %c0_i32_0 = arith.constant 0 : i32
    return %arg0, %c0_i32 : i32, i32
  }
  func.func @transform_1(%arg0: i32) -> (i32, i32) {
    %c0_i32 = arith.constant 0 : i32
    %c0_i32_0 = arith.constant 0 : i32
    return %arg0, %c0_i32 : i32, i32
  }
  func.func @transform_2(%arg0: i32) -> (i32, i32) {
    %c0_i32 = arith.constant 0 : i32
    %c0_i32_0 = arith.constant 0 : i32
    return %arg0, %c0_i32 : i32, i32
  }
  func.func @transform_3(%arg0: i32) -> (i32, i32) {
    %c0_i32 = arith.constant 0 : i32
    %c0_i32_0 = arith.constant 0 : i32
    return %arg0, %c0_i32 : i32, i32
  }
  func.func @transform_4(%arg0: i32) -> (i32, i32) {
    %c0_i32 = arith.constant 0 : i32
    %c0_i32_0 = arith.constant 0 : i32
    %c0_i32_1 = arith.constant 0 : i32
    return %c0_i32, %c0_i32_0 : i32, i32
  }
  func.func @transform_5(%arg0: i32) -> (i32, i32) {
    %c0_i32 = arith.constant 0 : i32
    %c0_i32_0 = arith.constant 0 : i32
    %c0_i32_1 = arith.constant 0 : i32
    return %c0_i32, %c0_i32_0 : i32, i32
  }
  func.func @transform_6(%arg0: i32) -> (i32, i32) {
    %c0_i32 = arith.constant 0 : i32
    %c0_i32_0 = arith.constant 0 : i32
    return %arg0, %c0_i32 : i32, i32
  }
}

</mosaic_0001>

<bundles_post_ra>
// kernel: tpu_custom_call.1
= control target key start
LH: loop header
LB: loop body
LE: loop exit
PB: predicated region body
PF: predicated region fallthrough
CT: control target
= control target key end

     0   :  { %vm38_vm0 = vcmask 261120   ;;  %s1975_s0 = inlined_call_operand.vmem [shape: f32[2,256], index: 0, kind: input, shape index: {}]   ;;  %s1976_s1 = inlined_call_operand.vmem [shape: f32[2,256], index: 1, kind: input, shape index: {}]   ;;  %s1977_s2 = inlined_call_operand.vmem [shape: f32[2,256], index: 2, kind: input, shape index: {}]   ;;  %s1978_s3 = inlined_call_operand.vmem [shape: f32[2,32], index: 3, kind: input, shape index: {}]   ;;  %s1979_s4 = inlined_call_operand.vmem [shape: f32[32,256], index: 4, kind: input, shape index: {}]   ;;  %s1980_s5 = inlined_call_operand.vmem [shape: f32[256,8], index: 5, kind: input, shape index: {}]   ;;  %s1981_s6 = inlined_call_operand.hbm [shape: f32[2,8], index: 6, kind: output, shape index: {}]  }
   0x1   :  { %v36_v0 = vld [vmem:[%s1979_s4 + $0x30] sm:$0xff]  ;;  %v34_v1 = vld [vmem:[%s1979_s4 + $0x20] sm:$0xff]  ;;  %v37_v10 = vld [vmem:[%s1979_s4 + $0x38] sm:$0xff] }
   0x2   :  { %v32_v2 = vld [vmem:[%s1979_s4 + $0x10] sm:$0xff]  ;;  %v1232_v3 = vand.u32 4294901760, %v36_v0  ;;  %v1234_v4 = vand.u32 4294901760, %v34_v1  ;;  %v30_v6 = vld [vmem:[%s1979_s4] sm:$0xff]  ;;  %v35_v11 = vld [vmem:[%s1979_s4 + $0x28] sm:$0xff] }
   0x3   :  { %v1236_v5 = vand.u32 4294901760, %v32_v2  ;;  %v29_v7 = vld [vmem:[%s1978_s3] sm:$0x3]  ;;  %v1244_v8 = vand.u32 4294901760, %v30_v6  ;;  %v33_v12 = vld [vmem:[%s1979_s4 + $0x18] sm:$0xff] }
   0x4   :  { %v40_v9 = vsel %vm38_vm0, %v29_v7, 0  ;;  %55 = vmatpush.msra.mxu0 %v1232_v3  ;;  %v84_v13 = vsub.f32 %v36_v0, %v1232_v3  ;;  %155 = vmatpush.msra.mxu3 %v1232_v3  ;;  %v90_v14 = vsub.f32 %v34_v1, %v1234_v4 }
   0x5   :  { %v1260_v15 = vsub.f32 %v32_v2, %v1236_v5  ;;  %v1262_v16 = vand.u32 4294901760, %v40_v9 }
   0x6   :  { %11 = vsyncpa [#allocation3], 0  ;;  %v1265_v17 = vsub.f32 %v30_v6, %v1244_v8  ;;  %v1267_v18 = vand.u32 4294901760, %v37_v10  ;;  %v1269_v19 = vand.u32 4294901760, %v35_v11  ;;  %v1271_v20 = vand.u32 4294901760, %v33_v12  ;;  %126 = vmatpush.msra.mxu2 %v84_v13  ;;  %57 = vmatpush.msra.mxu0 %v1234_v4  ;;  %v31_v36 = vld [vmem:[%s1979_s4 + $0x8] sm:$0xff] }
   0x7   :  { %v85_v21 = vand.u32 4294901760, %v84_v13  ;;  %v91_v22 = vand.u32 4294901760, %v90_v14  ;;  %v1275_v23 = vsub.f32 %v40_v9, %v1262_v16  ;;  %v97_v24 = vand.u32 4294901760, %v1260_v15  ;;  %157 = vmatpush.msra.mxu3 %v1234_v4  ;;  %v435_v51 = vld [vmem:[%s1980_s5 + $0x78] sm:$0xff]  ;;  %v434_v54 = vld [vmem:[%s1980_s5 + $0x70] sm:$0xff]  ;;  %v433_v57 = vld [vmem:[%s1980_s5 + $0x68] sm:$0xff] }
   0x8   :  { %v1280_v25 = vsub.f32 %v37_v10, %v1267_v18  ;;  %v103_v26 = vand.u32 4294901760, %v1265_v17  ;;  %v1284_v27 = vsub.f32 %v35_v11, %v1269_v19  ;;  %v1287_v28 = vsub.f32 %v33_v12, %v1271_v20  ;;  %129 = vmatpush.msra.mxu2 %v90_v14  ;;  %59 = vmatpush.msra.mxu0 %v1236_v5  ;;  %v432_v60 = vld [vmem:[%s1980_s5 + $0x60] sm:$0xff]  ;;  %v431_v63 = vld [vmem:[%s1980_s5 + $0x58] sm:$0xff]  ;;  %v430_v2 = vld [vmem:[%s1980_s5 + $0x50] sm:$0xff]  ;;  %s1149_s7 = sshll.u32 %s1981_s6, 4  ;;  %s1150_s7 = int_to_ptr.hbm [resolvable:$true] %s1149_s7 }
   0x9   :  { %v86_v29 = vsub.f32 %v84_v13, %v85_v21  ;;  %v92_v30 = vsub.f32 %v90_v14, %v91_v22  ;;  %v1291_v31 = vand.u32 4294901760, %v1275_v23  ;;  %v98_v32 = vsub.f32 %v1260_v15, %v97_v24  ;;  %159 = vmatpush.msra.mxu3 %v1236_v5 }
   0xa   :  { %v270_v33 = vand.u32 4294901760, %v1280_v25  ;;  %v276_v34 = vand.u32 4294901760, %v1284_v27  ;;  %v282_v35 = vand.u32 4294901760, %v1287_v28  ;;  %132 = vmatpush.msra.mxu2 %v1260_v15  ;;  %61 = vmatpush.msra.mxu0 %v1244_v8  ;;  %v104_v40 = vsub.f32 %v1265_v17, %v103_v26 }
   0xb   :  { %v87_v37 = vand.u32 4294901760, %v86_v29  ;;  %v93_v38 = vand.u32 4294901760, %v92_v30  ;;  %v65_v39 = vsub.f32 %v1275_v23, %v1291_v31  ;;  %161 = vmatpush.msra.mxu3 %v1244_v8  ;;  %v99_v44 = vand.u32 4294901760, %v98_v32 }
   0xc   :  { %184 = vmatpush.msrb.mxu0 %v85_v21  ;;  %v271_v41 = vsub.f32 %v1280_v25, %v270_v33  ;;  %v277_v42 = vsub.f32 %v1284_v27, %v276_v34  ;;  %135 = vmatpush.msra.mxu2 %v1265_v17  ;;  %v283_v45 = vsub.f32 %v1287_v28, %v282_v35  ;;  %v1317_v46 = vand.u32 4294901760, %v31_v36 }
   0xd   :  { %88 = vmatpush.msra.mxu1 %v87_v37  ;;  %v66_v43 = vand.u32 4294901760, %v65_v39  ;;  %138 = vmatmul.f32.vlgmr.msra.gmra.mxu2 %v1275_v23  ;;  %v105_v49 = vand.u32 4294901760, %v104_v40  ;;  %v1333_v55 = vand.u32 4294901760, %v435_v51  ;;  %v1341_v58 = vand.u32 4294901760, %v434_v54 }
   0xe   :  { %165 = vmatmul.f32.vlgmr.msra.gmra.mxu3 %v1291_v31  ;;  %v272_v47 = vand.u32 4294901760, %v271_v41  ;;  %v278_v48 = vand.u32 4294901760, %v277_v42  ;;  %v1322_v50 = vsub.f32 %v31_v36, %v1317_v46  ;;  %240 = vmatpush.msrb.mxu2 %v1267_v18  ;;  %v284_v52 = vand.u32 4294901760, %v283_v45  ;;  %v425_v42 = vld [vmem:[%s1980_s5 + $0x28] sm:$0xff] }
   0xf   :  { %94 = vmatpush.msra.mxu1 %v93_v38  ;;  %67 = vmatmul.f32.vlgmr.msra.gmra.mxu0 %v66_v43  ;;  %v1349_v61 = vsub.f32 %v435_v51, %v1333_v55  ;;  %v1351_v62 = vand.u32 4294901760, %v433_v57  ;;  %v1359_v0 = vsub.f32 %v434_v54, %v1341_v58  ;;  %v1361_v1 = vand.u32 4294901760, %v432_v60  ;;  %v426_v38 = vld [vmem:[%s1980_s5 + $0x30] sm:$0xff] }
  0x10   :  { %273 = vmatpush.msrb.mxu3 %v272_v47  ;;  %188 = vmatpush.msrb.mxu0 %v91_v22  ;;  %v288_v53 = vand.u32 4294901760, %v1322_v50  ;;  %v1375_v6 = vand.u32 4294901760, %v431_v63  ;;  %v1389_v10 = vand.u32 4294901760, %v430_v2  ;;  %v1488_v41 = vand.u32 4294901760, %v426_v38  ;;  %v424_v47 = vld [vmem:[%s1980_s5 + $0x20] sm:$0xff] }
  0x11   :  { %100 = vmatpush.msra.mxu1 %v99_v44  ;;  %242 = vmatpush.msrb.mxu2 %v1269_v19  ;;  %v507_v7 = vand.u32 4294901760, %v1359_v0  ;;  %v1387_v9 = vsub.f32 %v432_v60, %v1361_v1  ;;  %vm415_vm1 = vcmask 1041408   ;;  %vm1140_vm2 = vcmask 58368  }
  0x12   :  { %279 = vmatpush.msrb.mxu3 %v278_v48  ;;  %192 = vmatpush.msrb.mxu0 %v97_v24  ;;  %v289_v56 = vsub.f32 %v1322_v50, %v288_v53  ;;  %v1401_v12 = vsub.f32 %v431_v63, %v1375_v6  ;;  %v1413_v17 = vsub.f32 %v430_v2, %v1389_v10  ;;  %v422_v63 = vld [vmem:[%s1980_s5 + $0x10] sm:$0xff] }
  0x13   :  { %106 = vmatpush.msra.mxu1 %v105_v49  ;;  %244 = vmatpush.msrb.mxu2 %v1271_v20  ;;  %v508_v14 = vsub.f32 %v1359_v0, %v507_v7  ;;  %v519_v15 = vand.u32 4294901760, %v1387_v9  ;;  %v1500_v45 = vsub.f32 %v426_v38, %v1488_v41 }
  0x14   :  { %108 = vmatmul.f32.vlgmr.msra.gmra.mxu1 %v1262_v16  ;;  %285 = vmatpush.msrb.mxu3 %v284_v52  ;;  %v290_v59 = vand.u32 4294901760, %v289_v56  ;;  %v525_v21 = vand.u32 4294901760, %v1401_v12  ;;  %v531_v24 = vand.u32 4294901760, %v1413_v17  ;;  %v1519_v52 = vand.u32 4294901760, %v424_v47 }
  0x15   :  { %215 = vmatpush.msrb.mxu1 %v1232_v3  ;;  %246 = vmatpush.msrb.mxu2 %v1317_v46  ;;  %v501_v3 = vand.u32 4294901760, %v1349_v61 }
  0x16   :  { %196 = vmatpush.msrb.mxu0 %v103_v26  ;;  %291 = vmatpush.msrb.mxu3 %v290_v59  ;;  %v526_v26 = vsub.f32 %v1401_v12, %v525_v21  ;;  %v1533_v60 = vsub.f32 %v424_v47, %v1519_v52 }
  0x17   :  { %217 = vmatpush.msrb.mxu1 %v1234_v4  ;;  %198 = vmatmul.f32.vlgmr.msrb.gmra.mxu0 %v1262_v16  ;;  %v1373_v4 = vsub.f32 %v433_v57, %v1351_v62 }
  0x18   :  { %252 = vmatmul.f32.vlgmr.msrb.gmra.mxu2 %v66_v43  ;;  %293 = vmatmul.f32.vlgmr.msrb.gmra.mxu3 %v1262_v16  ;;  %v527_v29 = vand.u32 4294901760, %v526_v26 }
  0x19   :  { %219 = vmatpush.msrb.mxu1 %v1236_v5  ;;  %369 = vmatpush.msra.mxu2 %v270_v33  ;;  %v429_v5 = vld [vmem:[%s1980_s5 + $0x48] sm:$0xff]  ;;  %v513_v11 = vand.u32 4294901760, %v1373_v4  ;;  %v428_v33 = vld [vmem:[%s1980_s5 + $0x40] sm:$0xff] }
  0x1a   :  { %311 = vmatpush.msra.mxu0 %v1280_v25  ;;  %400 = vmatpush.msra.mxu3 %v1267_v18  ;;  %v1403_v13 = vand.u32 4294901760, %v429_v5 }
  0x1b   :  { %221 = vmatpush.msrb.mxu1 %v1244_v8  ;;  %373 = vmatpush.msra.mxu2 %v276_v34  ;;  %v502_v8 = vsub.f32 %v1349_v61, %v501_v3  ;;  %v1468_v34 = vand.u32 4294901760, %v428_v33 }
  0x1c   :  { %314 = vmatpush.msra.mxu0 %v1284_v27  ;;  %223 = vmatmul.f32.vlgmr.msrb.gmra.mxu1 %v1262_v16  ;;  %v1424_v22 = vsub.f32 %v429_v5, %v1403_v13 }
  0x1d   :  { %402 = vmatpush.msra.mxu3 %v1269_v19  ;;  %340 = vmatpush.msra.mxu1 %v1267_v18  ;;  %v503_v18 = vand.u32 4294901760, %v502_v8  ;;  %v1474_v36 = vsub.f32 %v428_v33, %v1468_v34 }
  0x1e   :  { %377 = vmatpush.msra.mxu2 %v282_v35  ;;  %317 = vmatpush.msra.mxu0 %v1287_v28  ;;  %v532_v28 = vsub.f32 %v1413_v17, %v531_v24  ;;  %v427_v35 = vld [vmem:[%s1980_s5 + $0x38] sm:$0xff] }
  0x1f   :  { %404 = vmatpush.msra.mxu3 %v1271_v20  ;;  %342 = vmatpush.msra.mxu1 %v1269_v19  ;;  %v514_v19 = vsub.f32 %v1373_v4, %v513_v11  ;;  %v1476_v37 = vand.u32 4294901760, %v427_v35  ;;  %v543_v39 = vand.u32 4294901760, %v1474_v36 }
  0x20   :  { %381 = vmatpush.msra.mxu2 %v288_v53  ;;  %320 = vmatpush.msra.mxu0 %v1322_v50  ;;  %v555_v50 = vand.u32 4294901760, %v1500_v45  ;;  %v423_v53 = vld [vmem:[%s1980_s5 + $0x18] sm:$0xff] }
  0x21   :  { %383 = vmatmul.f32.vlgmr.msra.gmra.mxu2 %v1262_v16  ;;  %323 = vmatmul.f32.vlgmr.msra.gmra.mxu0 %v1275_v23  ;;  %v509_v23 = vand.u32 4294901760, %v508_v14  ;;  %v515_v25 = vand.u32 4294901760, %v514_v19  ;;  %v1485_v40 = vsub.f32 %v427_v35, %v1476_v37  ;;  %v544_v43 = vsub.f32 %v1474_v36, %v543_v39  ;;  %v421_v19 = vld [vmem:[%s1980_s5 + $0x8] sm:$0xff] }
  0x22   :  { %344 = vmatpush.msra.mxu1 %v1271_v20  ;;  %406 = vmatpush.msra.mxu3 %v1317_v46  ;;  %v520_v20 = vsub.f32 %v1387_v9, %v519_v15  ;;  %v556_v56 = vsub.f32 %v1500_v45, %v555_v50  ;;  %v1530_v59 = vand.u32 4294901760, %v423_v53  ;;  %v1546_v14 = vand.u32 4294901760, %v422_v63 }
  0x23   :  { %602 = vmatpush.msrb.mxu2 %v1349_v61  ;;  %408 = vmatmul.f32.vlgmr.msra.gmra.mxu3 %v1262_v16  ;;  %v537_v16 = vand.u32 4294901760, %v1424_v22  ;;  %v549_v44 = vand.u32 4294901760, %v1485_v40  ;;  %v545_v48 = vand.u32 4294901760, %v544_v43  ;;  %v1558_v26 = vand.u32 4294901760, %v421_v19 }
  0x24   :  { %346 = vmatpush.msra.mxu1 %v1317_v46  ;;  %655 = vmatpush.msrb.mxu3 %v1333_v55  ;;  %v521_v27 = vand.u32 4294901760, %v520_v20  ;;  %v1503_v46 = vand.u32 4294901760, %v425_v42  ;;  %v557_v2 = vand.u32 4294901760, %v556_v56  ;;  %v1544_v8 = vsub.f32 %v423_v53, %v1530_v59  ;;  %v451_v53 = vld [vmem:[%s1980_s5 + $0xf8] sm:$0xff] }
  0x25   :  { %350 = vmatmul.f32.vlgmr.msra.gmra.mxu1 %v1291_v31  ;;  %605 = vmatpush.msrb.mxu2 %v1359_v0  ;;  %v538_v30 = vsub.f32 %v1424_v22, %v537_v16  ;;  %v533_v31 = vand.u32 4294901760, %v532_v28  ;;  %v550_v49 = vsub.f32 %v1485_v40, %v549_v44  ;;  %v420_v28 = vld [vmem:[%s1980_s5] sm:$0xff] }
  0x26   :  { %504 = vmatpush.msrb.mxu1 %v503_v18  ;;  %459 = vmatpush.msrb.mxu0 %v1333_v55  ;;  %v1515_v51 = vsub.f32 %v425_v42, %v1503_v46  ;;  %v567_v18 = vand.u32 4294901760, %v1533_v60  ;;  %v573_v20 = vand.u32 4294901760, %v1544_v8 }
  0x27   :  { %608 = vmatpush.msrb.mxu2 %v1373_v4  ;;  %657 = vmatpush.msrb.mxu3 %v1341_v58  ;;  %v539_v32 = vand.u32 4294901760, %v538_v30  ;;  %v551_v54 = vand.u32 4294901760, %v550_v49  ;;  %v447_v4 = vld [vmem:[%s1980_s5 + $0xd8] sm:$0xff] }
  0x28   :  { %510 = vmatpush.msrb.mxu1 %v509_v23  ;;  %461 = vmatpush.msrb.mxu0 %v1341_v58  ;;  %v561_v57 = vand.u32 4294901760, %v1515_v51 }
  0x29   :  { %611 = vmatpush.msrb.mxu2 %v1387_v9  ;;  %659 = vmatpush.msrb.mxu3 %v1351_v62  ;;  %v446_v9 = vld [vmem:[%s1980_s5 + $0xd0] sm:$0xff] }
  0x2a   :  { %516 = vmatpush.msrb.mxu1 %v515_v25  ;;  %463 = vmatpush.msrb.mxu0 %v1351_v62  ;;  %v562_v5 = vsub.f32 %v1515_v51, %v561_v57  ;;  %v1556_v25 = vsub.f32 %v422_v63, %v1546_v14 }
  0x2b   :  { %614 = vmatpush.msrb.mxu2 %v1401_v12  ;;  %661 = vmatpush.msrb.mxu3 %v1361_v1  ;;  %v445_v12 = vld [vmem:[%s1980_s5 + $0xc8] sm:$0xff] }
  0x2c   :  { %522 = vmatpush.msrb.mxu1 %v521_v27  ;;  %465 = vmatpush.msrb.mxu0 %v1361_v1  ;;  %v563_v23 = vand.u32 4294901760, %v562_v5  ;;  %v568_v27 = vsub.f32 %v1533_v60, %v567_v18  ;;  %v579_v30 = vand.u32 4294901760, %v1556_v25 }
  0x2d   :  { %617 = vmatpush.msrb.mxu2 %v1413_v17  ;;  %663 = vmatpush.msrb.mxu3 %v1375_v6  ;;  %v444_v17 = vld [vmem:[%s1980_s5 + $0xc0] sm:$0xff] }
  0x2e   :  { %528 = vmatpush.msrb.mxu1 %v527_v29  ;;  %467 = vmatpush.msrb.mxu0 %v1375_v6  ;;  %v574_v29 = vsub.f32 %v1544_v8, %v573_v20  ;;  %v569_v33 = vand.u32 4294901760, %v568_v27  ;;  %v580_v38 = vsub.f32 %v1556_v25, %v579_v30  ;;  %v449_v27 = vld [vmem:[%s1980_s5 + $0xe8] sm:$0xff] }
  0x2f   :  { %620 = vmatpush.msrb.mxu2 %v1424_v22  ;;  %665 = vmatpush.msrb.mxu3 %v1389_v10 }
  0x30   :  { %534 = vmatpush.msrb.mxu1 %v533_v31  ;;  %469 = vmatpush.msrb.mxu0 %v1389_v10  ;;  %v1574_v31 = vsub.f32 %v421_v19, %v1558_v26  ;;  %v575_v35 = vand.u32 4294901760, %v574_v29  ;;  %v581_v47 = vand.u32 4294901760, %v580_v38  ;;  %v448_v29 = vld [vmem:[%s1980_s5 + $0xe0] sm:$0xff] }
  0x31   :  { %667 = vmatpush.msrb.mxu3 %v1403_v13  ;;  %623 = vmatpush.msrb.mxu2 %v1474_v36 }
  0x32   :  { %540 = vmatpush.msrb.mxu1 %v539_v32  ;;  %471 = vmatpush.msrb.mxu0 %v1403_v13  ;;  %v1576_v32 = vand.u32 4294901760, %v420_v28  ;;  %v585_v42 = vand.u32 4294901760, %v1574_v31 }
  0x33   :  { %669 = vmatpush.msrb.mxu3 %v1468_v34  ;;  %626 = vmatpush.msrb.mxu2 %v1485_v40  ;;  %v440_v40 = vld [vmem:[%s1980_s5 + $0xa0] sm:$0xff] }
  0x34   :  { %473 = vmatpush.msrb.mxu0 %v1468_v34  ;;  %546 = vmatpush.msrb.mxu1 %v545_v48  ;;  %v1586_v43 = vsub.f32 %v420_v28, %v1576_v32  ;;  %v586_v48 = vsub.f32 %v1574_v31, %v585_v42 }
  0x35   :  { %671 = vmatpush.msrb.mxu3 %v1476_v37  ;;  %629 = vmatpush.msrb.mxu2 %v1500_v45 }
  0x36   :  { %475 = vmatpush.msrb.mxu0 %v1476_v37  ;;  %552 = vmatpush.msrb.mxu1 %v551_v54  ;;  %v591_v49 = vand.u32 4294901760, %v1586_v43  ;;  %v1600_v54 = vand.u32 4294901760, %v451_v53  ;;  %v587_v56 = vand.u32 4294901760, %v586_v48  ;;  %v1654_v48 = vand.u32 4294901760, %v447_v4 }
  0x37   :  { %673 = vmatpush.msrb.mxu3 %v1488_v41  ;;  %632 = vmatpush.msrb.mxu2 %v1515_v51 }
  0x38   :  { %477 = vmatpush.msrb.mxu0 %v1488_v41  ;;  %558 = vmatpush.msrb.mxu1 %v557_v2  ;;  %v592_v63 = vsub.f32 %v1586_v43, %v591_v49  ;;  %v450_v2 = vld [vmem:[%s1980_s5 + $0xf0] sm:$0xff]  ;;  %v1612_v5 = vsub.f32 %v451_v53, %v1600_v54  ;;  %v1670_v53 = vsub.f32 %v447_v4, %v1654_v48 }
  0x39   :  { %675 = vmatpush.msrb.mxu3 %v1503_v46  ;;  %635 = vmatpush.msrb.mxu2 %v1533_v60  ;;  %v1614_v19 = vand.u32 4294901760, %v450_v2 }
  0x3a   :  { %479 = vmatpush.msrb.mxu0 %v1503_v46  ;;  %564 = vmatpush.msrb.mxu1 %v563_v23  ;;  %v593_v23 = vand.u32 4294901760, %v592_v63  ;;  %v842_v61 = vand.u32 4294901760, %v1612_v5  ;;  %v1674_v63 = vand.u32 4294901760, %v446_v9 }
  0x3b   :  { %677 = vmatpush.msrb.mxu3 %v1519_v52  ;;  %638 = vmatpush.msrb.mxu2 %v1544_v8  ;;  %v1626_v28 = vsub.f32 %v450_v2, %v1614_v19  ;;  %v866_v2 = vand.u32 4294901760, %v1670_v53 }
  0x3c   :  { %481 = vmatpush.msrb.mxu0 %v1519_v52  ;;  %570 = vmatpush.msrb.mxu1 %v569_v33  ;;  %v843_v0 = vsub.f32 %v1612_v5, %v842_v61  ;;  %v1638_v33 = vand.u32 4294901760, %v448_v29 }
  0x3d   :  { %679 = vmatpush.msrb.mxu3 %v1530_v59  ;;  %641 = vmatpush.msrb.mxu2 %v1556_v25 }
  0x3e   :  { %483 = vmatpush.msrb.mxu0 %v1530_v59  ;;  %576 = vmatpush.msrb.mxu1 %v575_v35 }
  0x3f   :  { %681 = vmatpush.msrb.mxu3 %v1546_v14  ;;  %644 = vmatpush.msrb.mxu2 %v1574_v31 }
  0x40   :  { %485 = vmatpush.msrb.mxu0 %v1546_v14  ;;  %582 = vmatpush.msrb.mxu1 %v581_v47 }
  0x41   :  { %683 = vmatpush.msrb.mxu3 %v1558_v26  ;;  %647 = vmatpush.msrb.mxu2 %v1586_v43 }
  0x42   :  { %487 = vmatpush.msrb.mxu0 %v1558_v26  ;;  %588 = vmatpush.msrb.mxu1 %v587_v56 }
  0x43   :  { %685 = vmatpush.msrb.mxu3 %v1576_v32  ;;  %800 = vmatpush.msra.mxu2 %v1600_v54 }
  0x44   :  { %489 = vmatpush.msrb.mxu0 %v1576_v32  ;;  %594 = vmatpush.msrb.mxu1 %v593_v23  ;;  %v1682_v23 = vand.u32 4294901760, %v445_v12 }
  0x45   :  { %802 = vmatpush.msra.mxu2 %v1614_v19 }
  0x46   :  { %696 = vmatpush.msra.mxu0 %v501_v3  ;;  %v1623_v3 = vand.u32 4294901760, %v449_v27  ;;  %763 = vmatpush.msra.mxu1 %v1333_v55  ;;  %v1658_v55 = vsub.f32 %v448_v29, %v1638_v33  ;;  %v1698_v29 = vand.u32 4294901760, %v444_v17 }
  0x48   :  { %700 = vmatpush.msra.mxu0 %v507_v7  ;;  %804 = vmatpush.msra.mxu2 %v1623_v3  ;;  %v848_v7 = vand.u32 4294901760, %v1626_v28  ;;  %v1641_v35 = vsub.f32 %v449_v27, %v1623_v3  ;;  %v860_v56 = vand.u32 4294901760, %v1658_v55  ;;  %v1689_v27 = vsub.f32 %v446_v9, %v1674_v63 }
  0x49   :  { %765 = vmatpush.msra.mxu1 %v1341_v58  ;;  %v1715_v22 = vsub.f32 %v444_v17, %v1698_v29 }
  0x4a   :  { %704 = vmatpush.msra.mxu0 %v513_v11  ;;  %v844_v11 = vand.u32 4294901760, %v843_v0  ;;  %v849_v38 = vsub.f32 %v1626_v28, %v848_v7  ;;  %806 = vmatpush.msra.mxu2 %v1638_v33  ;;  %v854_v47 = vand.u32 4294901760, %v1641_v35  ;;  %v872_v4 = vand.u32 4294901760, %v1689_v27 }
  0x4b   :  { %767 = vmatpush.msra.mxu1 %v1351_v62  ;;  %v861_v62 = vsub.f32 %v1658_v55, %v860_v56 }
  0x4c   :  { %708 = vmatpush.msra.mxu0 %v519_v15  ;;  %845 = vmatpush.msra.mxu3 %v844_v11  ;;  %v855_v15 = vsub.f32 %v1641_v35, %v854_v47  ;;  %v850_v58 = vand.u32 4294901760, %v849_v38  ;;  %v443_v11 = vld [vmem:[%s1980_s5 + $0xb8] sm:$0xff] }
  0x4d   :  { %808 = vmatpush.msra.mxu2 %v1654_v48  ;;  %769 = vmatpush.msra.mxu1 %v1361_v1  ;;  %v1701_v1 = vsub.f32 %v445_v12, %v1682_v23  ;;  %v862_v0 = vand.u32 4294901760, %v861_v62  ;;  %v441_v62 = vld [vmem:[%s1980_s5 + $0xa8] sm:$0xff] }
  0x4e   :  { %712 = vmatpush.msra.mxu0 %v525_v21  ;;  %v856_v21 = vand.u32 4294901760, %v855_v15  ;;  %851 = vmatpush.msra.mxu3 %v850_v58  ;;  %v1712_v15 = vand.u32 4294901760, %v443_v11  ;;  %v442_v58 = vld [vmem:[%s1980_s5 + $0xb0] sm:$0xff] }
  0x4f   :  { %810 = vmatpush.msra.mxu2 %v1674_v63  ;;  %771 = vmatpush.msra.mxu1 %v1375_v6  ;;  %v878_v9 = vand.u32 4294901760, %v1701_v1  ;;  %v1733_v12 = vand.u32 4294901760, %v442_v58 }
  0x50   :  { %716 = vmatpush.msra.mxu0 %v531_v24  ;;  %v867_v24 = vsub.f32 %v1670_v53, %v866_v2  ;;  %857 = vmatpush.msra.mxu3 %v856_v21 }
  0x51   :  { %812 = vmatpush.msra.mxu2 %v1682_v23  ;;  %773 = vmatpush.msra.mxu1 %v1389_v10  ;;  %v879_v36 = vsub.f32 %v1701_v1, %v878_v9  ;;  %v1736_v10 = vsub.f32 %v443_v11, %v1712_v15  ;;  %v1749_v11 = vand.u32 4294901760, %v441_v62 }
  0x52   :  { %720 = vmatpush.msra.mxu0 %v537_v16  ;;  %v868_v38 = vand.u32 4294901760, %v867_v24  ;;  %863 = vmatpush.msra.mxu3 %v862_v0  ;;  %v873_v16 = vsub.f32 %v1689_v27, %v872_v4 }
  0x53   :  { %814 = vmatpush.msra.mxu2 %v1698_v29  ;;  %775 = vmatpush.msra.mxu1 %v1403_v13  ;;  %v880_v17 = vand.u32 4294901760, %v879_v36  ;;  %v1982_v0 = vand.u32 4294901760, %v1736_v10  ;;  %v1755_v13 = vsub.f32 %v442_v58, %v1733_v12 }
  0x54   :  { %724 = vmatpush.msra.mxu0 %v543_v39  ;;  %v1985_v39 = vand.u32 4294901760, %v1715_v22  ;;  %869 = vmatpush.msra.mxu3 %v868_v38  ;;  %v874_v21 = vand.u32 4294901760, %v873_v16 }
  0x55   :  { %816 = vmatpush.msra.mxu2 %v1712_v15  ;;  %777 = vmatpush.msra.mxu1 %v1468_v34  ;;  %v891_v45 = vsub.f32 %v1736_v10, %v1982_v0  ;;  %v1769_v34 = vsub.f32 %v441_v62, %v1749_v11  ;;  %v1983_v36 = vand.u32 4294901760, %v1755_v13 }
  0x56   :  { %728 = vmatpush.msra.mxu0 %v549_v44  ;;  %v885_v24 = vsub.f32 %v1715_v22, %v1985_v39  ;;  %875 = vmatpush.msra.mxu3 %v874_v21  ;;  %v439_v21 = vld [vmem:[%s1980_s5 + $0x98] sm:$0xff] }
  0x57   :  { %818 = vmatpush.msra.mxu2 %v1733_v12  ;;  %779 = vmatpush.msra.mxu1 %v1476_v37  ;;  %v1984_v62 = vand.u32 4294901760, %v1769_v34  ;;  %v1782_v0 = vand.u32 4294901760, %v439_v21  ;;  %v897_v37 = vsub.f32 %v1755_v13, %v1983_v36 }
  0x58   :  { %732 = vmatpush.msra.mxu0 %v555_v50  ;;  %v886_v16 = vand.u32 4294901760, %v885_v24  ;;  %v1766_v50 = vand.u32 4294901760, %v440_v40  ;;  %881 = vmatpush.msra.mxu3 %v880_v17  ;;  %v892_v24 = vand.u32 4294901760, %v891_v45  ;;  %v437_v45 = vld [vmem:[%s1980_s5 + $0x88] sm:$0xff] }
  0x59   :  { %820 = vmatpush.msra.mxu2 %v1749_v11  ;;  %781 = vmatpush.msra.mxu1 %v1488_v41  ;;  %v903_v60 = vsub.f32 %v1769_v34, %v1984_v62  ;;  %v1819_v39 = vand.u32 4294901760, %v437_v45 }
  0x5a   :  { %736 = vmatpush.msra.mxu0 %v561_v57  ;;  %v1785_v51 = vsub.f32 %v440_v40, %v1766_v50  ;;  %887 = vmatpush.msra.mxu3 %v886_v16  ;;  %v438_v57 = vld [vmem:[%s1980_s5 + $0x90] sm:$0xff]  ;;  %v1806_v40 = vsub.f32 %v439_v21, %v1782_v0  ;;  %v898_v16 = vand.u32 4294901760, %v897_v37 }
  0x5b   :  { %822 = vmatpush.msra.mxu2 %v1766_v50  ;;  %v1803_v41 = vand.u32 4294901760, %v438_v57  ;;  %783 = vmatpush.msra.mxu1 %v1503_v46  ;;  %v904_v36 = vand.u32 4294901760, %v903_v60  ;;  %v1842_v37 = vsub.f32 %v437_v45, %v1819_v39 }
  0x5c   :  { %740 = vmatpush.msra.mxu0 %v567_v18  ;;  %v908_v18 = vand.u32 4294901760, %v1785_v51  ;;  %893 = vmatpush.msra.mxu3 %v892_v24  ;;  %v914_v21 = vand.u32 4294901760, %v1806_v40  ;;  %v436_v24 = vld [vmem:[%s1980_s5 + $0x80] sm:$0xff] }
  0x5d   :  { %824 = vmatpush.msra.mxu2 %v1782_v0  ;;  %785 = vmatpush.msra.mxu1 %v1519_v52  ;;  %v1825_v46 = vsub.f32 %v438_v57, %v1803_v41 }
  0x5e   :  { %744 = vmatpush.msra.mxu0 %v573_v20  ;;  %v909_v62 = vsub.f32 %v1785_v51, %v908_v18  ;;  %899 = vmatpush.msra.mxu3 %v898_v16  ;;  %v915_v20 = vsub.f32 %v1806_v40, %v914_v21 }
  0x5f   :  { %826 = vmatpush.msra.mxu2 %v1803_v41  ;;  %787 = vmatpush.msra.mxu1 %v1530_v59 }
  0x60   :  { %748 = vmatpush.msra.mxu0 %v579_v30  ;;  %v910_v8 = vand.u32 4294901760, %v909_v62  ;;  %905 = vmatpush.msra.mxu3 %v904_v36  ;;  %v920_v30 = vand.u32 4294901760, %v1825_v46  ;;  %v1839_v62 = vand.u32 4294901760, %v436_v24  ;;  %v916_v60 = vand.u32 4294901760, %v915_v20 }
  0x61   :  { %828 = vmatpush.msra.mxu2 %v1819_v39  ;;  %789 = vmatpush.msra.mxu1 %v1546_v14 }
  0x62   :  { %752 = vmatpush.msra.mxu0 %v585_v42  ;;  %911 = vmatpush.msra.mxu3 %v910_v8  ;;  %v921_v59 = vsub.f32 %v1825_v46, %v920_v30  ;;  %v1987_v42 = vand.u32 4294901760, %v1842_v37 }
  0x63   :  { %830 = vmatpush.msra.mxu2 %v1839_v62  ;;  %791 = vmatpush.msra.mxu1 %v1558_v26 }
  0x64   :  { %756 = vmatpush.msra.mxu0 %v591_v49  ;;  %917 = vmatpush.msra.mxu3 %v916_v60  ;;  %v922_v43 = vand.u32 4294901760, %v921_v59  ;;  %v927_v14 = vsub.f32 %v1842_v37, %v1987_v42 }
  0x65   :  { %793 = vmatpush.msra.mxu1 %v1576_v32 }
  0x66   :  { %923 = vmatpush.msra.mxu3 %v922_v43  ;;  %v928_v45 = vand.u32 4294901760, %v927_v14 }
  0x68   :  { %929 = vmatpush.msra.mxu3 %v928_v45 }
  0x8c   :  { %v1719_v6 = vpop.f32.mrf.mxu0 }
  0x90   :  { %v1760_v38 = vpop.f32.mrf.mxu2 }
  0x91   :  { %v109_v44 = vpop.f32.mrf.mxu1  ;;  %v1773_v58 = vpop.f32.mrf.mxu3 }
  0x92   :  { %v110_v52 = vadd.f32 %v109_v44, %v1719_v6  ;;  %v1853_v6 = vsub.f32 %v436_v24, %v1839_v62  ;;  %v24_v24 = vld [vmem:[%s1975_s0] sm:$0xf]  ;;  %s1187_s0 = smov [#allocation2]  }
  0x94   :  { %v1796_v17 = vpop.f32.mrf.mxu0  ;;  %v140_v36 = vadd.f32 %v1760_v38, %v110_v52  ;;  %v1986_v49 = vand.u32 4294901760, %v1853_v6  ;;  %v25_v52 = vld [vmem:[%s1976_s1] sm:$0xf]  ;;  %s1147_s1 = sshll.u32 %s1187_s0, 4  ;;  %s1148_s1 = int_to_ptr.vmem [resolvable:$true] %s1147_s1 }
  0x95   :  { %v26_v59 = vadd.f32 %v25_v52, %v24_v24 }
  0x96   :  { %v933_v8 = vsub.f32 %v1853_v6, %v1986_v49  ;;  %v167_v26 = vadd.f32 %v1773_v58, %v140_v36  ;;  %v27_v58 = vld [vmem:[%s1977_s2] sm:$0xf] }
  0x97   :  { %v28_v14 = vadd.f32 %v27_v58, %v26_v59 }
  0x98   :  { %v934_v32 = vand.u32 4294901760, %v933_v8 }
  0x99   :  { %v224_v25 = vpop.f32.mrf.mxu1 }
  0x9a   :  { %935 = vmatpush.msra.mxu3 %v934_v32 }
  0x9b   :  { %v253_v57 = vpop.f32.mrf.mxu2  ;;  %v294_v31 = vpop.f32.mrf.mxu3 }
  0x9c   :  { %v295_v44 = vadd.f32 %v294_v31, %v253_v57 }
  0x9e   :  { %v324_v16 = vpop.f32.mrf.mxu0 }
  0x9f   :  { %v325_v38 = vadd.f32 %v324_v16, %v295_v44  ;;  %v200_v44 = vadd.f32 %v1796_v17, %v167_v26 }
  0xa1   :  { %v225_v16 = vadd.f32 %v224_v25, %v200_v44 }
  0xa2   :  { %v351_v20 = vpop.f32.mrf.mxu1 }
  0xa3   :  { %v352_v57 = vadd.f32 %v351_v20, %v325_v38 }
  0xa4   :  { %v384_v60 = vpop.f32.mrf.mxu2 }
  0xa5   :  { %v385_v31 = vadd.f32 %v384_v60, %v352_v57 }
  0xa6   :  { %v409_v36 = vpop.f32.mrf.mxu3 }
  0xa7   :  { %v410_v43 = vadd.f32 %v409_v36, %v385_v31 }
  0xa9   :  { %v414_v49 = vrot.slane %v410_v43, 6 }
  0xab   :  { %v416_v42 = vsel %vm415_vm1, %v225_v16, %v414_v49 }
  0xac   :  { %v418_v45 = vadd.f32 %v416_v42, %v28_v14 }
  0xae   :  { %1159 = vtanh.f32 %v418_v45 }
  0xb4   :  { %v1160_v8 = vpop.eup %1159 }
  0xb5   :  { %453 = vst [vmem:[#allocation1] ss:$4 sm:$0xff] %v1160_v8 }
  0xbc   :  { %v454_v38 = vld.sshfl [vmem:[#allocation1] sm:$0xff pattern:$0x73625140]  ;;  %v455_v20 = vld.sshfl [vmem:[#allocation1 + $0x8] sm:$0xff pattern:$0x73625140] }
  0xbd   :  { %v490_v24 = vand.u32 4294901760, %v454_v38  ;;  %v1877_v52 = vand.u32 4294901760, %v455_v20 }
  0xbf   :  { %596 = vmatmul.f32.vlgmr.msrb.gmra.mxu1 %v490_v24  ;;  %v491_v17 = vsub.f32 %v454_v38, %v490_v24  ;;  %v1880_v26 = vsub.f32 %v455_v20, %v1877_v52 }
  0xc0   :  { %996 = vmatpush.msrb.mxu1 %v1600_v54 }
  0xc1   :  { %650 = vmatmul.f32.vlgmr.msrb.gmra.mxu2 %v491_v17  ;;  %v492_v25 = vand.u32 4294901760, %v491_v17  ;;  %v833_v49 = vand.u32 4294901760, %v1880_v26 }
  0xc2   :  { %998 = vmatpush.msrb.mxu1 %v1614_v19  ;;  %1037 = vmatpush.msrb.mxu2 %v842_v61 }
  0xc3   :  { %689 = vmatmul.f32.vlgmr.msrb.gmra.mxu3 %v492_v25  ;;  %v493_v42 = vsub.f32 %v491_v17, %v492_v25  ;;  %v834_v32 = vsub.f32 %v1880_v26, %v833_v49 }
  0xc4   :  { %1000 = vmatpush.msrb.mxu1 %v1623_v3  ;;  %1041 = vmatpush.msrb.mxu2 %v848_v7  ;;  %v1993_v7 = vand.u32 4294901760, %v1853_v6 }
  0xc5   :  { %1104 = vmatpush.msrb.mxu3 %v1600_v54  ;;  %v494_v57 = vand.u32 4294901760, %v493_v42  ;;  %v835_v61 = vand.u32 4294901760, %v834_v32  ;;  %v1988_v54 = vand.u32 4294901760, %v1715_v22 }
  0xc6   :  { %1002 = vmatpush.msrb.mxu1 %v1638_v33  ;;  %1045 = vmatpush.msrb.mxu2 %v854_v47 }
  0xc7   :  { %1106 = vmatpush.msrb.mxu3 %v1614_v19  ;;  %495 = vmatmul.f32.vlgmr.msrb.gmra.mxu0 %v494_v57  ;;  %v1990_v19 = vand.u32 4294901760, %v1755_v13 }
  0xc8   :  { %795 = vmatmul.f32.vlgmr.msra.gmra.mxu1 %v490_v24  ;;  %943 = vmatpush.msrb.mxu0 %v1612_v5  ;;  %v1989_v5 = vand.u32 4294901760, %v1736_v10 }
  0xc9   :  { %1004 = vmatpush.msrb.mxu1 %v1654_v48  ;;  %1049 = vmatpush.msrb.mxu2 %v860_v56 }
  0xca   :  { %1108 = vmatpush.msrb.mxu3 %v1623_v3  ;;  %836 = vmatmul.f32.vlgmr.msra.gmra.mxu2 %v835_v61  ;;  %v1991_v3 = vand.u32 4294901760, %v1769_v34 }
  0xcb   :  { %946 = vmatpush.msrb.mxu0 %v1626_v28  ;;  %1006 = vmatpush.msrb.mxu1 %v1674_v63  ;;  %v1992_v28 = vand.u32 4294901760, %v1842_v37 }
  0xcc   :  { %1053 = vmatpush.msrb.mxu2 %v866_v2  ;;  %1110 = vmatpush.msrb.mxu3 %v1638_v33 }
  0xcd   :  { %937 = vmatmul.f32.vlgmr.msra.gmra.mxu3 %v1877_v52  ;;  %949 = vmatpush.msrb.mxu0 %v1641_v35 }
  0xce   :  { %1008 = vmatpush.msrb.mxu1 %v1682_v23  ;;  %1057 = vmatpush.msrb.mxu2 %v872_v4 }
  0xcf   :  { %1112 = vmatpush.msrb.mxu3 %v1654_v48  ;;  %952 = vmatpush.msrb.mxu0 %v1658_v55 }
  0xd0   :  { %1010 = vmatpush.msrb.mxu1 %v1698_v29  ;;  %1061 = vmatpush.msrb.mxu2 %v878_v9 }
  0xd1   :  { %1114 = vmatpush.msrb.mxu3 %v1674_v63  ;;  %758 = vmatmul.f32.vlgmr.msra.gmra.mxu0 %v490_v24 }
  0xd2   :  { %955 = vmatpush.msrb.mxu0 %v1670_v53  ;;  %1012 = vmatpush.msrb.mxu1 %v1712_v15 }
  0xd3   :  { %1065 = vmatpush.msrb.mxu2 %v1988_v54  ;;  %1116 = vmatpush.msrb.mxu3 %v1682_v23 }
  0xd4   :  { %958 = vmatpush.msrb.mxu0 %v1689_v27  ;;  %1014 = vmatpush.msrb.mxu1 %v1733_v12 }
  0xd5   :  { %1069 = vmatpush.msrb.mxu2 %v1989_v5  ;;  %1118 = vmatpush.msrb.mxu3 %v1698_v29 }
  0xd6   :  { %961 = vmatpush.msrb.mxu0 %v1701_v1  ;;  %1016 = vmatpush.msrb.mxu1 %v1749_v11 }
  0xd7   :  { %1073 = vmatpush.msrb.mxu2 %v1990_v19  ;;  %1120 = vmatpush.msrb.mxu3 %v1712_v15 }
  0xd8   :  { %964 = vmatpush.msrb.mxu0 %v1715_v22  ;;  %1018 = vmatpush.msrb.mxu1 %v1766_v50 }
  0xd9   :  { %1077 = vmatpush.msrb.mxu2 %v1991_v3  ;;  %1122 = vmatpush.msrb.mxu3 %v1733_v12 }
  0xda   :  { %967 = vmatpush.msrb.mxu0 %v1736_v10  ;;  %1020 = vmatpush.msrb.mxu1 %v1782_v0 }
  0xdb   :  { %1081 = vmatpush.msrb.mxu2 %v908_v18  ;;  %1124 = vmatpush.msrb.mxu3 %v1749_v11 }
  0xdc   :  { %970 = vmatpush.msrb.mxu0 %v1755_v13  ;;  %1022 = vmatpush.msrb.mxu1 %v1803_v41 }
  0xdd   :  { %1085 = vmatpush.msrb.mxu2 %v914_v21  ;;  %1126 = vmatpush.msrb.mxu3 %v1766_v50 }
  0xde   :  { %973 = vmatpush.msrb.mxu0 %v1769_v34  ;;  %1024 = vmatpush.msrb.mxu1 %v1819_v39 }
  0xdf   :  { %1089 = vmatpush.msrb.mxu2 %v920_v30  ;;  %1128 = vmatpush.msrb.mxu3 %v1782_v0 }
  0xe0   :  { %976 = vmatpush.msrb.mxu0 %v1785_v51  ;;  %1026 = vmatpush.msrb.mxu1 %v1839_v62 }
  0xe1   :  { %1093 = vmatpush.msrb.mxu2 %v1992_v28  ;;  %1130 = vmatpush.msrb.mxu3 %v1803_v41 }
  0xe2   :  { %1030 = vmatmul.f32.vlgmr.msrb.gmra.mxu1 %v833_v49  ;;  %979 = vmatpush.msrb.mxu0 %v1806_v40 }
  0xe3   :  { %1097 = vmatpush.msrb.mxu2 %v1993_v7  ;;  %1132 = vmatpush.msrb.mxu3 %v1819_v39 }
  0xe4   :  { %1099 = vmatmul.f32.vlgmr.msrb.gmra.mxu2 %v1877_v52  ;;  %982 = vmatpush.msrb.mxu0 %v1825_v46 }
  0xe5   :  { %1134 = vmatpush.msrb.mxu3 %v1839_v62 }
  0xe6   :  { %1136 = vmatmul.f32.vlgmr.msrb.gmra.mxu3 %v1877_v52  ;;  %985 = vmatpush.msrb.mxu0 %v1842_v37 }
  0xe8   :  { %988 = vmatpush.msrb.mxu0 %v1853_v6 }
  0xe9   :  { %991 = vmatmul.f32.vlgmr.msrb.gmra.mxu0 %v1880_v26 }
 0x13c   :  { %v597_v35 = vpop.f32.mrf.mxu1 }
 0x144   :  { %v496_v33 = vpop.f32.mrf.mxu0  ;;  %v651_v48 = vpop.f32.mrf.mxu2 }
 0x145   :  { %v598_v47 = vadd.f32 %v597_v35, %v496_v33  ;;  %v796_v23 = vpop.f32.mrf.mxu1 }
 0x146   :  { %v690_v53 = vpop.f32.mrf.mxu3 }
 0x147   :  { %v652_v55 = vadd.f32 %v651_v48, %v598_v47 }
 0x149   :  { %v691_v63 = vadd.f32 %v690_v53, %v652_v55 }
 0x14d   :  { %v837_v29 = vpop.f32.mrf.mxu2 }
 0x14e   :  { %v759_v56 = vpop.f32.mrf.mxu0 }
 0x14f   :  { %v760_v2 = vadd.f32 %v759_v56, %v691_v63 }
 0x150   :  { %v938_v4 = vpop.f32.mrf.mxu3 }
 0x151   :  { %v797_v27 = vadd.f32 %v796_v23, %v760_v2 }
 0x153   :  { %v838_v1 = vadd.f32 %v837_v29, %v797_v27 }
 0x155   :  { %v939_v9 = vadd.f32 %v938_v4, %v838_v1 }
 0x15f   :  { %v1031_v39 = vpop.f32.mrf.mxu1 }
 0x166   :  { %v992_v15 = vpop.f32.mrf.mxu0 }
 0x167   :  { %v993_v22 = vadd.f32 %v992_v15, %v939_v9  ;;  %v1100_v10 = vpop.f32.mrf.mxu2 }
 0x169   :  { %v1032_v12 = vadd.f32 %v1031_v39, %v993_v22  ;;  %v1137_v11 = vpop.f32.mrf.mxu3 }
 0x16b   :  { %v1101_v0 = vadd.f32 %v1100_v10, %v1032_v12 }
 0x16d   :  { %v1138_v13 = vadd.f32 %v1137_v11, %v1101_v0 }
 0x16f   :  { %1141 = vst.msk [vmem:[#allocation2] sm:$0x3] %vm1140_vm2, %v1138_v13 }
 0x170   :  { %1152 = dma.vmem_to_hbm [thread:$0]  %s1148_s1, 32, %s1150_s7, [#allocation3]  }
 0x171   :  { %1185 = dma.done.wait [#allocation3], 32  }
 0x172   :  { %1186 = vsyncadd [#allocation3], 4294967264 }
 0x173   :  { %1157 = vsyncpa [#allocation3], 1 }

</bundles_post_ra>
